<compile_context>
chip_gen: v5e
topology: v5e:2x2
jax: 0.10.0
libtpu: 0.0.40
codegen_flags: <defaults>
</compile_context>

<pallas_src>
import jax
import jax.numpy as jnp
from jax.experimental import pallas as pl
from jax.experimental.pallas import tpu as pltpu


def _linear_nt_kernel(x_ref, w_ref, o_ref):
    """One output tile: o = x @ w^T with the full K contraction in one shot.

    x_ref: (tm, K)   activations
    w_ref: (tn, K)   weight in PyTorch nn.Linear layout (no transpose anywhere)
    o_ref: (tm, tn)  logits tile (lane-dense: tn is a multiple of 128)
    """
    o_ref[...] = jax.lax.dot_general(
        x_ref[...],
        w_ref[...],
        dimension_numbers=(((1,), (1,)), ((), ())),  # contract last dims (NT matmul)
        preferred_element_type=jnp.float32,          # f32 accumulation on the MXU
    ).astype(o_ref.dtype)


def _pick_tiles(B, N, K, in_itemsize, out_itemsize):
    """Pick (tm, tn) for a full-K, single-pass contraction.

    Budget the double-buffered pipeline footprint against v5e's 16 MiB
    scoped-VMEM default (the smallest of v5e/v6e/v7x) with headroom.
    """
    budget = 12 * 1024 * 1024

    def vmem_bytes(tm, tn):
        # 2x double-buffered inputs + 2x double-buffered output tile.
        return 2 * (tm * K + tn * K) * in_itemsize + 2 * tm * tn * out_itemsize

    # Batch is the sublane dim of the output tile; keep it one full block when
    # small ("equal full array dim" satisfies the (8,128) rule for any B).
    tm = B if B <= 256 else 256

    # Largest lane-dense tn that fits the VMEM budget.
    tn = 128
    for cand in (4096, 2048, 1024, 512, 256, 128):
        if vmem_bytes(tm, cand) <= budget:
            tn = cand
            break
    # Shrink tn while the cdiv edge block would be mostly padding
    # (dead weight-DMA and MXU work for ragged n_class like 5000).
    while tn > 128 and (pl.cdiv(N, tn) * tn - N) > tn // 2:
        tn //= 2

    # TODO(synk): K-tiled accumulator fallback for in_nodes too large for VMEM
    # (module default in_nodes=256, so the single-pass path always fits here).
    assert vmem_bytes(tm, tn) <= budget, "in_nodes too large for single-K-pass tiling"
    return tm, tn


@jax.jit
def softmax_layer_forward(x, weight):
    """Forward of SoftmaxLayer: logits = x @ weight.T; returns (logits, logits).

    x:      (B, in_nodes)
    weight: (n_class, in_nodes)  -- PyTorch nn.Linear layout, consumed as-is.
            Pass a bf16 weight (pre-cast once, outside the hot path) for the
            mixed-precision path; accumulation stays f32.
    """
    B, K = x.shape
    N, K2 = weight.shape
    assert K == K2, "in_nodes mismatch"

    compute_dtype = weight.dtype
    x_c = x.astype(compute_dtype)  # activations are tiny; cast is free
    out_dtype = x.dtype

    tm, tn = _pick_tiles(
        B, N, K, jnp.dtype(compute_dtype).itemsize, jnp.dtype(out_dtype).itemsize
    )

    # No reduction axis: K is contracted in one shot. Ragged B / N handled by
    # cdiv + Pallas edge-block masking (no wrapper-side padding of the weight).
    grid = (pl.cdiv(B, tm), pl.cdiv(N, tn))

    logits = pl.pallas_call(
        _linear_nt_kernel,
        out_shape=jax.ShapeDtypeStruct((B, N), out_dtype),
        grid=grid,
        in_specs=[
            pl.BlockSpec((tm, K), lambda i, j: (i, 0)),
            pl.BlockSpec((tn, K), lambda i, j: (j, 0)),
        ],
        out_specs=pl.BlockSpec((tm, tn), lambda i, j: (i, j)),
        compiler_params=pltpu.CompilerParams(
            # Both axes independent -> shardable across v7x's two TensorCores.
            dimension_semantics=("parallel", "parallel")
        ),
    )(x_c, weight)

    # The module returns the same tensor twice.
    return logits, logits


if __name__ == "__main__":
    # Module defaults: in_nodes=256, n_class=5000 (ragged vs 128 lanes), batch=8.
    B, IN_NODES, N_CLASS = 8, 256, 5000

    key = jax.random.PRNGKey(0)
    kx, kw = jax.random.split(key)
    x = jax.random.normal(kx, (B, IN_NODES), dtype=jnp.float32)
    # Deterministic init mimicking nn.Linear default (uniform(-1/sqrt(fan_in), +)).
    bound = 1.0 / (IN_NODES ** 0.5)
    weight = jax.random.uniform(
        kw, (N_CLASS, IN_NODES), dtype=jnp.float32, minval=-bound, maxval=bound
    )

    # f32 path (exactly matches the PyTorch module's semantics).
    out1, out2 = softmax_layer_forward(x, weight)
    jax.block_until_ready((out1, out2))
    ref = x @ weight.T
    assert out1.shape == (B, N_CLASS)
    assert jnp.allclose(out1, ref, atol=1e-4, rtol=1e-4)
    assert jnp.allclose(out2, ref, atol=1e-4, rtol=1e-4)

    # Optional bf16-weight path: pre-cast the (static) weight once outside the
    # hot path; halves weight HBM traffic and doubles MXU rate, f32 accumulate.
    w_bf16 = weight.astype(jnp.bfloat16)
    out_bf, _ = softmax_layer_forward(x, w_bf16)
    jax.block_until_ready(out_bf)
    assert jnp.allclose(out_bf, ref, atol=8e-2, rtol=8e-2)

    print("KERNEL_OK")
</pallas_src>

<mosaic_0001>
module attributes {stable_mosaic.version = 11 : i64} {
  func.func @_linear_nt_kernel(%arg0: i32, %arg1: i32, %arg2: memref<8x256xf32, #tpu.memory_space<vmem>>, %arg3: memref<1024x256xf32, #tpu.memory_space<vmem>>, %arg4: memref<8x1024xf32, #tpu.memory_space<vmem>>) attributes {dimension_semantics = [#tpu.dimension_semantics<parallel>, #tpu.dimension_semantics<parallel>], iteration_bounds = array<i64: 1, 5>, scalar_prefetch = 0 : i64, scratch_operands = 0 : i64, tpu.core_type = #tpu.core_type<tc>, window_params = [{transform_indices = @transform_0, window_bounds = array<i64: 8, 256>}, {transform_indices = @transform_1, window_bounds = array<i64: 1024, 256>}, {transform_indices = @transform_2, window_bounds = array<i64: 8, 1024>}]} {
    %c0 = arith.constant 0 : index
    %c0_0 = arith.constant 0 : index
    %0 = vector.load %arg2[%c0, %c0_0] : memref<8x256xf32, #tpu.memory_space<vmem>>, vector<8x256xf32>
    %c0_1 = arith.constant 0 : index
    %c0_2 = arith.constant 0 : index
    %1 = vector.load %arg3[%c0_1, %c0_2] : memref<1024x256xf32, #tpu.memory_space<vmem>>, vector<1024x256xf32>
    %cst = arith.constant dense<0.000000e+00> : vector<8x1024xf32>
    %2 = tpu.matmul %0, %1, %cst {dimension_numbers = #tpu.dot_dimension_numbers<[1], [1], [0], [0], [0, 0, 1, 0], [], []>} : vector<8x256xf32>, vector<1024x256xf32>, vector<8x1024xf32> -> vector<8x1024xf32>
    %c0_3 = arith.constant 0 : index
    %c0_4 = arith.constant 0 : index
    %3 = vector.load %arg4[%c0_3, %c0_4] : memref<8x1024xf32, #tpu.memory_space<vmem>>, vector<8x1024xf32>
    tpu.vector_store %arg4[%c0_3, %c0_4], %2 {strides = array<i32>} : memref<8x1024xf32, #tpu.memory_space<vmem>>, vector<8x1024xf32>,
    return
  }
  func.func @transform_0(%arg0: i32, %arg1: i32) -> (i32, i32) {
    %c0_i32 = arith.constant 0 : i32
    %c0_i32_0 = arith.constant 0 : i32
    return %arg0, %c0_i32 : i32, i32
  }
  func.func @transform_1(%arg0: i32, %arg1: i32) -> (i32, i32) {
    %c0_i32 = arith.constant 0 : i32
    %c0_i32_0 = arith.constant 0 : i32
    return %arg1, %c0_i32 : i32, i32
  }
  func.func @transform_2(%arg0: i32, %arg1: i32) -> (i32, i32) {
    %c0_i32 = arith.constant 0 : i32
    return %arg0, %arg1 : i32, i32
  }
}

</mosaic_0001>

<bundles_post_ra>
// kernel: softmax_layer_forward.1
= control target key start
LH: loop header
LB: loop body
LE: loop exit
PB: predicated region body
PF: predicated region fallthrough
CT: control target
= control target key end

     0   :  { %7 = vsyncpa [#allocation3], 0  ;;  %s1584_s0 = inlined_call_operand.hbm [shape: f32[8,256], index: 0, kind: input, shape index: {}]   ;;  %s1585_s1 = inlined_call_operand.hbm [shape: f32[5000,256], index: 1, kind: input, shape index: {}]   ;;  %s1586_s2 = inlined_call_operand.vmem [shape: f32[8,5000], index: 2, kind: output, shape index: {}]  }
   0x1   :  { %8 = vsyncpa [#allocation5], 0 }
   0x2   :  { %10 = vsyncpa [#allocation5 + $0x1], 0  ;;  %s1149_s9 = smov 0   ;;  %s1151_s10 = smov 0  }
   0x3   :  { %s1153_s11 = smov 0   ;;  %s1155_s12 = smov 0  }
   0x4   :  { %s1157_s13 = smov 0   ;;  %s1159_s14 = smov 0  }
   0x5 LB: > { %s919_s15 = sadd.s32 4294967295, %s1128_s14   ;;  %s25_s16 = sadd.s32 1, %s1124_s13  ;;  %s1128_s14 = sphi %s1159_s14, %s16_s14   ;;  %s1124_s13 = sphi %s1157_s13, %s1596_s13   ;;  %s1120_s12 = sphi %s1155_s12, %s1595_s12   ;;  %s1116_s11 = sphi %s1153_s11, %s1594_s11   ;;  %s1112_s10 = sphi %s1151_s10, %s1593_s10   ;;  %s1108_s9 = sphi %s1149_s9, %s1592_s9  }
   0x6   : > { %p26_p0 = scmp.ge.s32.totalorder %s25_s16, 5  ;;  %s61_s17 = sadd.s32 1, %s1116_s11 }
   0x7   : > { %p68_p1 = scmp.ne.s32.totalorder %s1116_s11, %s1112_s10  ;;  %p69_p2 = scmp.eq.s32.totalorder %s1128_s14, 0 }
   0x8   : > { %s1598_s16 = smov (%p26_p0, %s25_s16), 0  ;;  %p74_p4 = scmp.ne.s32.totalorder %s1112_s10, %s1108_s9 }
   0x9   : > { %p1185_p3 = por %p69_p2, %p68_p1  ;;  %s58_s19 = ssub.s32 %s1124_s13, %s1598_s16 }
   0xa   : > { %p1192_p5 = scmp.eq.s32.totalorder %s919_s15, 0  ;;  %p59_p6 = scmp.eq.s32.totalorder %s58_s19, 0 }
   0xb   : > { %p921_p7 = scmp.ge.s32.totalorder %s1128_s14, 1  ;;  %p113_p9 = scmp.lt.s32.totalorder %s1128_s14, 6 }
   0xc   : > { %p1199_p8 = por %p1192_p5, %p74_p4  ;;  %s128_s26 = sshll.u32 %s1584_s0, 4  ;;  %s129_s26 = int_to_ptr.hbm [resolvable:$true] %s128_s26 }
   0xd   : > { %s1205_s22 = scalar_select %p59_p6, %s1116_s11, %s61_s17  }
   0xe   : > { %p1207_p10 = pnand %p921_p7, %p113_p9  ;;  %s1130_s27 = smov [#allocation2]  }
   0xf   : > { %s130_s28 = sshll.u32 %s1130_s27, 4  ;;  %p923_p13 = scmp.ge.s32.totalorder %s1128_s14, 5  ;;  %s131_s28 = int_to_ptr.vmem [resolvable:$true] %s130_s28 }
  0x10   : > { %p948_p11 = pneg %p1207_p10 }
  0x11   : > { %137 = sbr.rel (%p923_p13) target bundleno = 58 (0x3a), region = 20 }
  0x12   : > { %p949_p12 = pnand %p948_p11, %p1192_p5 }
  0x14   : > { %951 = dma.hbm_to_vmem [thread:$0]  (!%p949_p12), %s129_s26, 256, %s131_s28, [#allocation3]  }
  0x16   : > { %140 = sbr.rel (!%p1185_p3) target bundleno = 58 (0x3a), region = 24  ;;  %s141_s29 = sand.u32 (%p1185_p3), 1, %s1116_s11  }
  0x17   : > { %s925_s30 = sshll.u32 (%p1185_p3), %s1124_s13, 7  ;;  %s924_s3 = sshll.u32 (%p1185_p3), %s141_s29, 11 }
  0x18   : > { %s147_s4 = ssub.s32 (%p1185_p3), 625, %s925_s30  ;;  %s1226_s8 = scalar_lea.sflag (%p1185_p3), [#allocation5], %s141_s29 }
  0x19   : > { %p148_p0 = scmp.lt.s32.totalorder (%p1185_p3), %s147_s4, 128  ;;  %s145_s9 = scalar_lea.vmem (%p1185_p3), [#allocation4], %s924_s3 }
  0x1b   : > { %s1600_s4 = smov (!%p148_p0, %s147_s4), 128 }
  0x1c   : > { %s940_s5 = sshll.u32 %s1600_s4, 4 }
  0x1d   : > { %s152_s6 = ssub.s32 2048, %s940_s5 }
  0x1e   : > { %s153_s7 = sshll.u32 %s152_s6, 4 }
  0x1f   : > { %154 = vsyncadd %s1226_s8, %s153_s7  ;;  %p1229_p1 = scmp.ne.s32.totalorder %s940_s5, 0  ;;  %s942_s17 = sshll.u32 %s1124_s13, 11 }
  0x20   : > { %s158_s24 = scalar_lea.hbm %s1585_s1, %s942_s17  ;;  %s1237_s25 = sshll.u32 %s145_s9, 4  ;;  %s163_s25 = int_to_ptr.vmem [resolvable:$true] %s1237_s25 }
  0x21   : > { %s160_s26 = sshll.u32 %s158_s24, 4  ;;  %s932_s27 = sshll.u32 %s1600_s4, 8  ;;  %s1240_s26 = int_to_ptr.hbm [resolvable:$true] %s160_s26 }
  0x22   : > { %s1035_s28 = sshra.s32 %s1240_s26, 4  ;;  %s1037_s29 = sshrl.u32 %s932_s27, 4  ;;  %s1036_s28 = int_to_ptr.hbm [resolvable:$true] %s1035_s28 }
  0x23   : > { %s1042_s30 = scalar_lea.hbm %s1036_s28, %s1037_s29  ;;  %s1046_s6 = scalar_lea.hbm %s1585_s1, 10000 }
  0x24   : > { %p1043_p2 = scmp.ne.s32.totalorder %s1036_s28, %s1042_s30  ;;  %p1048_p6 = scmp.lt.s32.totalorder %s1046_s6, %s1042_s30 }
  0x26   : > { %p1044_p3 = pnand %p1043_p2, %p1229_p1 }
  0x28   : > { %p1045_p4 = pneg %p1044_p3 }
  0x2a   : > { %p1050_p7 = pnand %p1048_p6, %p1045_p4 }
  0x2c   : > { %1053 = shalt.err (!%p1050_p7)
}
  0x2d   : > { %s1054_s7 = sshra.s32 %s163_s25, 4  ;;  %s1131_s17 = smov [#allocation4]   ;;  %s1055_s7 = int_to_ptr.vmem [resolvable:$true] %s1054_s7 }
  0x2e   : > { %s1061_s9 = scalar_lea.vmem %s1055_s7, %s1037_s29  ;;  %s1065_s18 = scalar_lea.vmem %s1131_s17, 4096 }
  0x2f   : > { %p1062_p9 = scmp.ne.s32.totalorder %s1055_s7, %s1061_s9  ;;  %p1067_p13 = scmp.lt.s32.totalorder %s1065_s18, %s1061_s9 }
  0x31   : > { %p1063_p11 = pnand %p1062_p9, %p1229_p1 }
  0x33   : > { %p1064_p12 = pneg %p1063_p11 }
  0x35   : > { %p1069_p0 = pnand %p1067_p13, %p1064_p12 }
  0x37   : > { %1072 = shalt.err (!%p1069_p0)
}
  0x38   : > { %s1132_s19 = smov 256   ;;  %s1133_s24 = smov 16  }
  0x39   : > { %168 = dma.hbm_to_vmem [thread:$0]  (%p1229_p1), %s1240_s26, %s932_s27, %s163_s25, %s1226_s8, %s1132_s19, %s1132_s19, %s1133_s24  }
  0x3a PF: > { %174 = sbr.rel (%p1207_p10) target bundleno = 459 (0x1cb), region = 28 }
  0x3f   : > { %1099 = dma.done.wait (%p1192_p5), [#allocation3], 256  }
  0x40   : > { %1101 = vsyncadd (%p1192_p5), [#allocation3], 4294967040  ;;  %s181_s28 = sand.u32 1, %s1112_s10  }
  0x41   : > { %s935_s29 = sshll.u32 %s181_s28, 11  ;;  %s182_s30 = scalar_lea.sflag [#allocation5], %s181_s28 }
  0x42   : > { %s1270_s15 = scalar_lea.vmem [#allocation4], %s935_s29 }
  0x43   : > { %1103 = dma.done.wait (%p1199_p8), %s182_s30, 32768  }
  0x44   : > { %1105 = vsyncadd (%p1199_p8), %s182_s30, 4294934528  ;;  %v291_v0 = vld [vmem:[%s1270_s15 + $0x1f0] sm:$0xff]  ;;  %v292_v1 = vld [vmem:[%s1270_s15 + $0x1f8] sm:$0xff]  ;;  %s936_s20 = sshll.u32 %s1120_s12, 3 }
  0x45   : > { %525 = vmatpush.xpose.msra.mxu2 %v291_v0  ;;  %545 = vmatpush.xpose.msra.mxu3 %v292_v1  ;;  %v259_v2 = vld [vmem:[%s1270_s15 + $0xf0] sm:$0xff]  ;;  %v260_v3 = vld [vmem:[%s1270_s15 + $0xf8] sm:$0xff]  ;;  %v289_v4 = vld [vmem:[%s1270_s15 + $0x1e0] sm:$0xff]  ;;  %p220_p5 = scmp.lt.s32.totalorder %s936_s20, 39 }
  0x46   : > { %v290_v5 = vld [vmem:[%s1270_s15 + $0x1e8] sm:$0xff]  ;;  %485 = vmatpush.xpose.msra.mxu0 %v259_v2  ;;  %505 = vmatpush.xpose.msra.mxu1 %v260_v3  ;;  %v257_v6 = vld [vmem:[%s1270_s15 + $0xe0] sm:$0xff]  ;;  %v287_v8 = vld [vmem:[%s1270_s15 + $0x1d0] sm:$0xff] }
  0x47   : > { %v258_v7 = vld [vmem:[%s1270_s15 + $0xe8] sm:$0xff]  ;;  %v288_v9 = vld [vmem:[%s1270_s15 + $0x1d8] sm:$0xff]  ;;  %v255_v10 = vld [vmem:[%s1270_s15 + $0xd0] sm:$0xff]  ;;  %s1602_s20 = smov (!%p220_p5, %s936_s20), 39 }
  0x48   : > { %v256_v11 = vld [vmem:[%s1270_s15 + $0xd8] sm:$0xff]  ;;  %v285_v12 = vld [vmem:[%s1270_s15 + $0x1c0] sm:$0xff]  ;;  %v286_v13 = vld [vmem:[%s1270_s15 + $0x1c8] sm:$0xff]  ;;  %s937_s12 = sshll.u32 %s1602_s20, 3 }
  0x49   : > { %526 = vmatpush.xpose.msra.mxu2 %v289_v4  ;;  %546 = vmatpush.xpose.msra.mxu3 %v290_v5  ;;  %v253_v14 = vld [vmem:[%s1270_s15 + $0xc0] sm:$0xff]  ;;  %v254_v15 = vld [vmem:[%s1270_s15 + $0xc8] sm:$0xff]  ;;  %v283_v16 = vld [vmem:[%s1270_s15 + $0x1b0] sm:$0xff]  ;;  %s1526_s4 = scalar_lea.vmem %s1586_s2, %s937_s12 }
  0x4a   : > { %486 = vmatpush.xpose.msra.mxu0 %v257_v6  ;;  %506 = vmatpush.xpose.msra.mxu1 %v258_v7  ;;  %v284_v17 = vld [vmem:[%s1270_s15 + $0x1b8] sm:$0xff]  ;;  %v251_v18 = vld [vmem:[%s1270_s15 + $0xb0] sm:$0xff]  ;;  %v281_v20 = vld [vmem:[%s1270_s15 + $0x1a0] sm:$0xff] }
  0x4b   : > { %v252_v19 = vld [vmem:[%s1270_s15 + $0xb8] sm:$0xff]  ;;  %v282_v21 = vld [vmem:[%s1270_s15 + $0x1a8] sm:$0xff]  ;;  %v249_v22 = vld [vmem:[%s1270_s15 + $0xa0] sm:$0xff] }
  0x4c   : > { %v250_v23 = vld [vmem:[%s1270_s15 + $0xa8] sm:$0xff]  ;;  %v279_v24 = vld [vmem:[%s1270_s15 + $0x190] sm:$0xff]  ;;  %v280_v25 = vld [vmem:[%s1270_s15 + $0x198] sm:$0xff] }
  0x4d   : > { %527 = vmatpush.xpose.msra.mxu2 %v287_v8  ;;  %547 = vmatpush.xpose.msra.mxu3 %v288_v9  ;;  %v247_v26 = vld [vmem:[%s1270_s15 + $0x90] sm:$0xff]  ;;  %v248_v27 = vld [vmem:[%s1270_s15 + $0x98] sm:$0xff]  ;;  %v277_v28 = vld [vmem:[%s1270_s15 + $0x180] sm:$0xff] }
  0x4e   : > { %487 = vmatpush.xpose.msra.mxu0 %v255_v10  ;;  %507 = vmatpush.xpose.msra.mxu1 %v256_v11  ;;  %v278_v29 = vld [vmem:[%s1270_s15 + $0x188] sm:$0xff]  ;;  %v245_v30 = vld [vmem:[%s1270_s15 + $0x80] sm:$0xff]  ;;  %v275_v32 = vld [vmem:[%s1270_s15 + $0x170] sm:$0xff] }
  0x4f   : > { %v246_v31 = vld [vmem:[%s1270_s15 + $0x88] sm:$0xff]  ;;  %v276_v33 = vld [vmem:[%s1270_s15 + $0x178] sm:$0xff]  ;;  %v243_v34 = vld [vmem:[%s1270_s15 + $0x70] sm:$0xff] }
  0x50   : > { %v244_v35 = vld [vmem:[%s1270_s15 + $0x78] sm:$0xff]  ;;  %v273_v36 = vld [vmem:[%s1270_s15 + $0x160] sm:$0xff]  ;;  %v274_v37 = vld [vmem:[%s1270_s15 + $0x168] sm:$0xff] }
  0x51   : > { %528 = vmatpush.xpose.msra.mxu2 %v285_v12  ;;  %548 = vmatpush.xpose.msra.mxu3 %v286_v13  ;;  %v241_v38 = vld [vmem:[%s1270_s15 + $0x60] sm:$0xff]  ;;  %v242_v39 = vld [vmem:[%s1270_s15 + $0x68] sm:$0xff]  ;;  %v271_v40 = vld [vmem:[%s1270_s15 + $0x150] sm:$0xff] }
  0x52   : > { %488 = vmatpush.xpose.msra.mxu0 %v253_v14  ;;  %508 = vmatpush.xpose.msra.mxu1 %v254_v15  ;;  %v272_v41 = vld [vmem:[%s1270_s15 + $0x158] sm:$0xff]  ;;  %v239_v42 = vld [vmem:[%s1270_s15 + $0x50] sm:$0xff]  ;;  %v269_v44 = vld [vmem:[%s1270_s15 + $0x140] sm:$0xff] }
  0x53   : > { %v240_v43 = vld [vmem:[%s1270_s15 + $0x58] sm:$0xff]  ;;  %v270_v45 = vld [vmem:[%s1270_s15 + $0x148] sm:$0xff]  ;;  %v237_v46 = vld [vmem:[%s1270_s15 + $0x40] sm:$0xff] }
  0x54   : > { %v238_v47 = vld [vmem:[%s1270_s15 + $0x48] sm:$0xff]  ;;  %v267_v48 = vld [vmem:[%s1270_s15 + $0x130] sm:$0xff]  ;;  %v268_v49 = vld [vmem:[%s1270_s15 + $0x138] sm:$0xff] }
  0x55   : > { %529 = vmatpush.xpose.msra.mxu2 %v283_v16  ;;  %549 = vmatpush.xpose.msra.mxu3 %v284_v17  ;;  %v235_v50 = vld [vmem:[%s1270_s15 + $0x30] sm:$0xff]  ;;  %v236_v51 = vld [vmem:[%s1270_s15 + $0x38] sm:$0xff]  ;;  %v265_v52 = vld [vmem:[%s1270_s15 + $0x120] sm:$0xff] }
  0x56   : > { %489 = vmatpush.xpose.msra.mxu0 %v251_v18  ;;  %509 = vmatpush.xpose.msra.mxu1 %v252_v19  ;;  %v266_v53 = vld [vmem:[%s1270_s15 + $0x128] sm:$0xff]  ;;  %v233_v54 = vld [vmem:[%s1270_s15 + $0x20] sm:$0xff]  ;;  %v263_v56 = vld [vmem:[%s1270_s15 + $0x110] sm:$0xff] }
  0x57   : > { %v234_v55 = vld [vmem:[%s1270_s15 + $0x28] sm:$0xff]  ;;  %v264_v57 = vld [vmem:[%s1270_s15 + $0x118] sm:$0xff]  ;;  %v231_v58 = vld [vmem:[%s1270_s15 + $0x10] sm:$0xff] }
  0x58   : > { %v232_v59 = vld [vmem:[%s1270_s15 + $0x18] sm:$0xff]  ;;  %v261_v60 = vld [vmem:[%s1270_s15 + $0x100] sm:$0xff]  ;;  %v262_v61 = vld [vmem:[%s1270_s15 + $0x108] sm:$0xff] }
  0x59   : > { %530 = vmatpush.xpose.msra.mxu2 %v281_v20  ;;  %550 = vmatpush.xpose.msra.mxu3 %v282_v21  ;;  %v355_v62 = vld [vmem:[%s1270_s15 + $0x3f0] sm:$0xff]  ;;  %v356_v63 = vld [vmem:[%s1270_s15 + $0x3f8] sm:$0xff]  ;;  %v229_v0 = vld [vmem:[%s1270_s15] sm:$0xff] }
  0x5a   : > { %490 = vmatpush.xpose.msra.mxu0 %v249_v22  ;;  %510 = vmatpush.xpose.msra.mxu1 %v250_v23  ;;  %v230_v1 = vld [vmem:[%s1270_s15 + $0x8] sm:$0xff]  ;;  %v323_v2 = vld [vmem:[%s1270_s15 + $0x2f0] sm:$0xff]  ;;  %v324_v3 = vld [vmem:[%s1270_s15 + $0x2f8] sm:$0xff] }
  0x5b   : > { %v353_v4 = vld [vmem:[%s1270_s15 + $0x3e0] sm:$0xff]  ;;  %v354_v5 = vld [vmem:[%s1270_s15 + $0x3e8] sm:$0xff]  ;;  %v351_v8 = vld [vmem:[%s1270_s15 + $0x3d0] sm:$0xff] }
  0x5c   : > { %v321_v6 = vld [vmem:[%s1270_s15 + $0x2e0] sm:$0xff]  ;;  %v322_v7 = vld [vmem:[%s1270_s15 + $0x2e8] sm:$0xff]  ;;  %v352_v9 = vld [vmem:[%s1270_s15 + $0x3d8] sm:$0xff] }
  0x5d   : > { %531 = vmatpush.xpose.msra.mxu2 %v279_v24  ;;  %551 = vmatpush.xpose.msra.mxu3 %v280_v25  ;;  %v319_v10 = vld [vmem:[%s1270_s15 + $0x2d0] sm:$0xff]  ;;  %v320_v11 = vld [vmem:[%s1270_s15 + $0x2d8] sm:$0xff]  ;;  %v349_v12 = vld [vmem:[%s1270_s15 + $0x3c0] sm:$0xff] }
  0x5e   : > { %491 = vmatpush.xpose.msra.mxu0 %v247_v26  ;;  %511 = vmatpush.xpose.msra.mxu1 %v248_v27  ;;  %v350_v13 = vld [vmem:[%s1270_s15 + $0x3c8] sm:$0xff]  ;;  %v317_v14 = vld [vmem:[%s1270_s15 + $0x2c0] sm:$0xff]  ;;  %v347_v16 = vld [vmem:[%s1270_s15 + $0x3b0] sm:$0xff] }
  0x5f   : > { %v318_v15 = vld [vmem:[%s1270_s15 + $0x2c8] sm:$0xff]  ;;  %v348_v17 = vld [vmem:[%s1270_s15 + $0x3b8] sm:$0xff]  ;;  %v315_v18 = vld [vmem:[%s1270_s15 + $0x2b0] sm:$0xff] }
  0x60   : > { %v316_v19 = vld [vmem:[%s1270_s15 + $0x2b8] sm:$0xff]  ;;  %v345_v20 = vld [vmem:[%s1270_s15 + $0x3a0] sm:$0xff]  ;;  %v346_v21 = vld [vmem:[%s1270_s15 + $0x3a8] sm:$0xff] }
  0x61   : > { %532 = vmatpush.xpose.msra.mxu2 %v277_v28  ;;  %552 = vmatpush.xpose.msra.mxu3 %v278_v29  ;;  %v313_v22 = vld [vmem:[%s1270_s15 + $0x2a0] sm:$0xff]  ;;  %v314_v23 = vld [vmem:[%s1270_s15 + $0x2a8] sm:$0xff]  ;;  %v343_v24 = vld [vmem:[%s1270_s15 + $0x390] sm:$0xff] }
  0x62   : > { %492 = vmatpush.xpose.msra.mxu0 %v245_v30  ;;  %512 = vmatpush.xpose.msra.mxu1 %v246_v31  ;;  %v344_v25 = vld [vmem:[%s1270_s15 + $0x398] sm:$0xff]  ;;  %v311_v26 = vld [vmem:[%s1270_s15 + $0x290] sm:$0xff]  ;;  %v341_v28 = vld [vmem:[%s1270_s15 + $0x380] sm:$0xff] }
  0x63   : > { %v312_v27 = vld [vmem:[%s1270_s15 + $0x298] sm:$0xff]  ;;  %v342_v29 = vld [vmem:[%s1270_s15 + $0x388] sm:$0xff]  ;;  %v309_v30 = vld [vmem:[%s1270_s15 + $0x280] sm:$0xff] }
  0x64   : > { %v310_v31 = vld [vmem:[%s1270_s15 + $0x288] sm:$0xff] }
  0x65   : > { %533 = vmatpush.xpose.msra.mxu2 %v275_v32  ;;  %553 = vmatpush.xpose.msra.mxu3 %v276_v33  ;;  %v1372_v32 = vld [vmem:[#allocation2] sm:$0xff]  ;;  %v1374_v33 = vld [vmem:[#allocation2 + $0x8] sm:$0xff] }
  0x66   : > { %493 = vmatpush.xpose.msra.mxu0 %v243_v34  ;;  %513 = vmatpush.xpose.msra.mxu1 %v244_v35  ;;  %v339_v34 = vld [vmem:[%s1270_s15 + $0x370] sm:$0xff]  ;;  %v340_v35 = vld [vmem:[%s1270_s15 + $0x378] sm:$0xff] }
  0x69   : > { %534 = vmatpush.xpose.msra.mxu2 %v273_v36  ;;  %554 = vmatpush.xpose.msra.mxu3 %v274_v37  ;;  %v307_v36 = vld [vmem:[%s1270_s15 + $0x270] sm:$0xff]  ;;  %v308_v37 = vld [vmem:[%s1270_s15 + $0x278] sm:$0xff] }
  0x6a   : > { %494 = vmatpush.xpose.msra.mxu0 %v241_v38  ;;  %514 = vmatpush.xpose.msra.mxu1 %v242_v39  ;;  %v337_v38 = vld [vmem:[%s1270_s15 + $0x360] sm:$0xff]  ;;  %v338_v39 = vld [vmem:[%s1270_s15 + $0x368] sm:$0xff] }
  0x6d   : > { %535 = vmatpush.xpose.msra.mxu2 %v271_v40  ;;  %555 = vmatpush.xpose.msra.mxu3 %v272_v41  ;;  %v305_v40 = vld [vmem:[%s1270_s15 + $0x260] sm:$0xff]  ;;  %v306_v41 = vld [vmem:[%s1270_s15 + $0x268] sm:$0xff] }
  0x6e   : > { %495 = vmatpush.xpose.msra.mxu0 %v239_v42  ;;  %515 = vmatpush.xpose.msra.mxu1 %v240_v43  ;;  %v335_v42 = vld [vmem:[%s1270_s15 + $0x350] sm:$0xff]  ;;  %v336_v43 = vld [vmem:[%s1270_s15 + $0x358] sm:$0xff] }
  0x71   : > { %536 = vmatpush.xpose.msra.mxu2 %v269_v44  ;;  %556 = vmatpush.xpose.msra.mxu3 %v270_v45  ;;  %v303_v44 = vld [vmem:[%s1270_s15 + $0x250] sm:$0xff]  ;;  %v304_v45 = vld [vmem:[%s1270_s15 + $0x258] sm:$0xff] }
  0x72   : > { %496 = vmatpush.xpose.msra.mxu0 %v237_v46  ;;  %516 = vmatpush.xpose.msra.mxu1 %v238_v47  ;;  %v333_v46 = vld [vmem:[%s1270_s15 + $0x340] sm:$0xff]  ;;  %v334_v47 = vld [vmem:[%s1270_s15 + $0x348] sm:$0xff] }
  0x75   : > { %537 = vmatpush.xpose.msra.mxu2 %v267_v48  ;;  %557 = vmatpush.xpose.msra.mxu3 %v268_v49  ;;  %v301_v48 = vld [vmem:[%s1270_s15 + $0x240] sm:$0xff]  ;;  %v302_v49 = vld [vmem:[%s1270_s15 + $0x248] sm:$0xff] }
  0x76   : > { %497 = vmatpush.xpose.msra.mxu0 %v235_v50  ;;  %517 = vmatpush.xpose.msra.mxu1 %v236_v51  ;;  %v331_v50 = vld [vmem:[%s1270_s15 + $0x330] sm:$0xff]  ;;  %v332_v51 = vld [vmem:[%s1270_s15 + $0x338] sm:$0xff] }
  0x79   : > { %538 = vmatpush.xpose.msra.mxu2 %v265_v52  ;;  %558 = vmatpush.xpose.msra.mxu3 %v266_v53  ;;  %v299_v52 = vld [vmem:[%s1270_s15 + $0x230] sm:$0xff]  ;;  %v300_v53 = vld [vmem:[%s1270_s15 + $0x238] sm:$0xff] }
  0x7a   : > { %498 = vmatpush.xpose.msra.mxu0 %v233_v54  ;;  %518 = vmatpush.xpose.msra.mxu1 %v234_v55  ;;  %v329_v54 = vld [vmem:[%s1270_s15 + $0x320] sm:$0xff]  ;;  %v330_v55 = vld [vmem:[%s1270_s15 + $0x328] sm:$0xff] }
  0x7d   : > { %539 = vmatpush.xpose.msra.mxu2 %v263_v56  ;;  %559 = vmatpush.xpose.msra.mxu3 %v264_v57  ;;  %v297_v56 = vld [vmem:[%s1270_s15 + $0x220] sm:$0xff]  ;;  %v298_v57 = vld [vmem:[%s1270_s15 + $0x228] sm:$0xff] }
  0x7e   : > { %499 = vmatpush.xpose.msra.mxu0 %v231_v58  ;;  %519 = vmatpush.xpose.msra.mxu1 %v232_v59  ;;  %v327_v58 = vld [vmem:[%s1270_s15 + $0x310] sm:$0xff]  ;;  %v328_v59 = vld [vmem:[%s1270_s15 + $0x318] sm:$0xff] }
  0x81   : > { %540 = vmatpush.xpose.msra.mxu2 %v261_v60  ;;  %560 = vmatpush.xpose.msra.mxu3 %v262_v61  ;;  %v295_v60 = vld [vmem:[%s1270_s15 + $0x210] sm:$0xff]  ;;  %v296_v61 = vld [vmem:[%s1270_s15 + $0x218] sm:$0xff] }
  0x82   : > { %500 = vmatpush.xpose.msra.mxu0 %v229_v0  ;;  %520 = vmatpush.xpose.msra.mxu1 %v230_v1  ;;  %v419_v0 = vld [vmem:[%s1270_s15 + $0x5f0] sm:$0xff]  ;;  %v420_v1 = vld [vmem:[%s1270_s15 + $0x5f8] sm:$0xff] }
  0x84   : > { %541 = vmatmul.f32.vlgmr.msra.gmra.mxu2 %v1372_v32  ;;  %561 = vmatmul.f32.vlgmr.msra.gmra.mxu3 %v1374_v33 }
  0x85   : > { %605 = vmatpush.xpose.msrb.mxu2 %v355_v62  ;;  %625 = vmatpush.xpose.msrb.mxu3 %v356_v63  ;;  %v325_v62 = vld [vmem:[%s1270_s15 + $0x300] sm:$0xff]  ;;  %v326_v63 = vld [vmem:[%s1270_s15 + $0x308] sm:$0xff] }
  0x86   : > { %565 = vmatpush.xpose.msrb.mxu0 %v323_v2  ;;  %585 = vmatpush.xpose.msrb.mxu1 %v324_v3  ;;  %v293_v2 = vld [vmem:[%s1270_s15 + $0x200] sm:$0xff]  ;;  %v294_v3 = vld [vmem:[%s1270_s15 + $0x208] sm:$0xff] }
  0x87   : > { %501 = vmatmul.f32.vlgmr.msra.gmra.mxu0 %v1372_v32  ;;  %521 = vmatmul.f32.vlgmr.msra.gmra.mxu1 %v1374_v33 }
  0x89   : > { %606 = vmatpush.xpose.msrb.mxu2 %v353_v4  ;;  %626 = vmatpush.xpose.msrb.mxu3 %v354_v5  ;;  %v387_v4 = vld [vmem:[%s1270_s15 + $0x4f0] sm:$0xff]  ;;  %v388_v5 = vld [vmem:[%s1270_s15 + $0x4f8] sm:$0xff] }
  0x8a   : > { %566 = vmatpush.xpose.msrb.mxu0 %v321_v6  ;;  %586 = vmatpush.xpose.msrb.mxu1 %v322_v7  ;;  %v417_v6 = vld [vmem:[%s1270_s15 + $0x5e0] sm:$0xff]  ;;  %v418_v7 = vld [vmem:[%s1270_s15 + $0x5e8] sm:$0xff] }
  0x8d   : > { %607 = vmatpush.xpose.msrb.mxu2 %v351_v8  ;;  %627 = vmatpush.xpose.msrb.mxu3 %v352_v9  ;;  %v385_v8 = vld [vmem:[%s1270_s15 + $0x4e0] sm:$0xff]  ;;  %v386_v9 = vld [vmem:[%s1270_s15 + $0x4e8] sm:$0xff] }
  0x8e   : > { %567 = vmatpush.xpose.msrb.mxu0 %v319_v10  ;;  %587 = vmatpush.xpose.msrb.mxu1 %v320_v11  ;;  %v415_v10 = vld [vmem:[%s1270_s15 + $0x5d0] sm:$0xff]  ;;  %v416_v11 = vld [vmem:[%s1270_s15 + $0x5d8] sm:$0xff] }
  0x91   : > { %608 = vmatpush.xpose.msrb.mxu2 %v349_v12  ;;  %628 = vmatpush.xpose.msrb.mxu3 %v350_v13  ;;  %v383_v12 = vld [vmem:[%s1270_s15 + $0x4d0] sm:$0xff]  ;;  %v384_v13 = vld [vmem:[%s1270_s15 + $0x4d8] sm:$0xff] }
  0x92   : > { %568 = vmatpush.xpose.msrb.mxu0 %v317_v14  ;;  %588 = vmatpush.xpose.msrb.mxu1 %v318_v15  ;;  %v413_v14 = vld [vmem:[%s1270_s15 + $0x5c0] sm:$0xff]  ;;  %v414_v15 = vld [vmem:[%s1270_s15 + $0x5c8] sm:$0xff] }
  0x95   : > { %609 = vmatpush.xpose.msrb.mxu2 %v347_v16  ;;  %629 = vmatpush.xpose.msrb.mxu3 %v348_v17  ;;  %v381_v16 = vld [vmem:[%s1270_s15 + $0x4c0] sm:$0xff]  ;;  %v382_v17 = vld [vmem:[%s1270_s15 + $0x4c8] sm:$0xff] }
  0x96   : > { %569 = vmatpush.xpose.msrb.mxu0 %v315_v18  ;;  %589 = vmatpush.xpose.msrb.mxu1 %v316_v19  ;;  %v411_v18 = vld [vmem:[%s1270_s15 + $0x5b0] sm:$0xff]  ;;  %v412_v19 = vld [vmem:[%s1270_s15 + $0x5b8] sm:$0xff] }
  0x99   : > { %610 = vmatpush.xpose.msrb.mxu2 %v345_v20  ;;  %630 = vmatpush.xpose.msrb.mxu3 %v346_v21  ;;  %v379_v20 = vld [vmem:[%s1270_s15 + $0x4b0] sm:$0xff]  ;;  %v380_v21 = vld [vmem:[%s1270_s15 + $0x4b8] sm:$0xff] }
  0x9a   : > { %570 = vmatpush.xpose.msrb.mxu0 %v313_v22  ;;  %590 = vmatpush.xpose.msrb.mxu1 %v314_v23  ;;  %v409_v22 = vld [vmem:[%s1270_s15 + $0x5a0] sm:$0xff]  ;;  %v410_v23 = vld [vmem:[%s1270_s15 + $0x5a8] sm:$0xff] }
  0x9d   : > { %611 = vmatpush.xpose.msrb.mxu2 %v343_v24  ;;  %631 = vmatpush.xpose.msrb.mxu3 %v344_v25  ;;  %v377_v24 = vld [vmem:[%s1270_s15 + $0x4a0] sm:$0xff]  ;;  %v378_v25 = vld [vmem:[%s1270_s15 + $0x4a8] sm:$0xff] }
  0x9e   : > { %571 = vmatpush.xpose.msrb.mxu0 %v311_v26  ;;  %591 = vmatpush.xpose.msrb.mxu1 %v312_v27  ;;  %v407_v26 = vld [vmem:[%s1270_s15 + $0x590] sm:$0xff]  ;;  %v408_v27 = vld [vmem:[%s1270_s15 + $0x598] sm:$0xff] }
  0xa1   : > { %612 = vmatpush.xpose.msrb.mxu2 %v341_v28  ;;  %632 = vmatpush.xpose.msrb.mxu3 %v342_v29  ;;  %v375_v28 = vld [vmem:[%s1270_s15 + $0x490] sm:$0xff]  ;;  %v376_v29 = vld [vmem:[%s1270_s15 + $0x498] sm:$0xff] }
  0xa2   : > { %572 = vmatpush.xpose.msrb.mxu0 %v309_v30  ;;  %592 = vmatpush.xpose.msrb.mxu1 %v310_v31  ;;  %v405_v30 = vld [vmem:[%s1270_s15 + $0x580] sm:$0xff]  ;;  %v406_v31 = vld [vmem:[%s1270_s15 + $0x588] sm:$0xff] }
  0xa5   : > { %613 = vmatpush.xpose.msrb.mxu2 %v339_v34  ;;  %633 = vmatpush.xpose.msrb.mxu3 %v340_v35  ;;  %v373_v34 = vld [vmem:[%s1270_s15 + $0x480] sm:$0xff]  ;;  %v374_v35 = vld [vmem:[%s1270_s15 + $0x488] sm:$0xff] }
  0xa6   : > { %573 = vmatpush.xpose.msrb.mxu0 %v307_v36  ;;  %593 = vmatpush.xpose.msrb.mxu1 %v308_v37  ;;  %v403_v36 = vld [vmem:[%s1270_s15 + $0x570] sm:$0xff]  ;;  %v404_v37 = vld [vmem:[%s1270_s15 + $0x578] sm:$0xff] }
  0xa9   : > { %614 = vmatpush.xpose.msrb.mxu2 %v337_v38  ;;  %634 = vmatpush.xpose.msrb.mxu3 %v338_v39  ;;  %v371_v38 = vld [vmem:[%s1270_s15 + $0x470] sm:$0xff]  ;;  %v372_v39 = vld [vmem:[%s1270_s15 + $0x478] sm:$0xff] }
  0xaa   : > { %574 = vmatpush.xpose.msrb.mxu0 %v305_v40  ;;  %594 = vmatpush.xpose.msrb.mxu1 %v306_v41  ;;  %v401_v40 = vld [vmem:[%s1270_s15 + $0x560] sm:$0xff]  ;;  %v402_v41 = vld [vmem:[%s1270_s15 + $0x568] sm:$0xff] }
  0xad   : > { %615 = vmatpush.xpose.msrb.mxu2 %v335_v42  ;;  %635 = vmatpush.xpose.msrb.mxu3 %v336_v43  ;;  %v369_v42 = vld [vmem:[%s1270_s15 + $0x460] sm:$0xff]  ;;  %v370_v43 = vld [vmem:[%s1270_s15 + $0x468] sm:$0xff] }
  0xae   : > { %575 = vmatpush.xpose.msrb.mxu0 %v303_v44  ;;  %595 = vmatpush.xpose.msrb.mxu1 %v304_v45  ;;  %v399_v44 = vld [vmem:[%s1270_s15 + $0x550] sm:$0xff]  ;;  %v400_v45 = vld [vmem:[%s1270_s15 + $0x558] sm:$0xff] }
  0xb1   : > { %616 = vmatpush.xpose.msrb.mxu2 %v333_v46  ;;  %636 = vmatpush.xpose.msrb.mxu3 %v334_v47  ;;  %v367_v46 = vld [vmem:[%s1270_s15 + $0x450] sm:$0xff]  ;;  %v368_v47 = vld [vmem:[%s1270_s15 + $0x458] sm:$0xff] }
  0xb2   : > { %576 = vmatpush.xpose.msrb.mxu0 %v301_v48  ;;  %596 = vmatpush.xpose.msrb.mxu1 %v302_v49  ;;  %v397_v48 = vld [vmem:[%s1270_s15 + $0x540] sm:$0xff]  ;;  %v398_v49 = vld [vmem:[%s1270_s15 + $0x548] sm:$0xff] }
  0xb5   : > { %617 = vmatpush.xpose.msrb.mxu2 %v331_v50  ;;  %637 = vmatpush.xpose.msrb.mxu3 %v332_v51  ;;  %v365_v50 = vld [vmem:[%s1270_s15 + $0x440] sm:$0xff]  ;;  %v366_v51 = vld [vmem:[%s1270_s15 + $0x448] sm:$0xff] }
  0xb6   : > { %577 = vmatpush.xpose.msrb.mxu0 %v299_v52  ;;  %597 = vmatpush.xpose.msrb.mxu1 %v300_v53  ;;  %v395_v52 = vld [vmem:[%s1270_s15 + $0x530] sm:$0xff]  ;;  %v396_v53 = vld [vmem:[%s1270_s15 + $0x538] sm:$0xff] }
  0xb9   : > { %618 = vmatpush.xpose.msrb.mxu2 %v329_v54  ;;  %638 = vmatpush.xpose.msrb.mxu3 %v330_v55  ;;  %v363_v54 = vld [vmem:[%s1270_s15 + $0x430] sm:$0xff]  ;;  %v364_v55 = vld [vmem:[%s1270_s15 + $0x438] sm:$0xff] }
  0xba   : > { %578 = vmatpush.xpose.msrb.mxu0 %v297_v56  ;;  %598 = vmatpush.xpose.msrb.mxu1 %v298_v57  ;;  %v393_v56 = vld [vmem:[%s1270_s15 + $0x520] sm:$0xff]  ;;  %v394_v57 = vld [vmem:[%s1270_s15 + $0x528] sm:$0xff] }
  0xbd   : > { %619 = vmatpush.xpose.msrb.mxu2 %v327_v58  ;;  %639 = vmatpush.xpose.msrb.mxu3 %v328_v59  ;;  %v361_v58 = vld [vmem:[%s1270_s15 + $0x420] sm:$0xff]  ;;  %v362_v59 = vld [vmem:[%s1270_s15 + $0x428] sm:$0xff] }
  0xbe   : > { %579 = vmatpush.xpose.msrb.mxu0 %v295_v60  ;;  %599 = vmatpush.xpose.msrb.mxu1 %v296_v61  ;;  %v391_v60 = vld [vmem:[%s1270_s15 + $0x510] sm:$0xff]  ;;  %v392_v61 = vld [vmem:[%s1270_s15 + $0x518] sm:$0xff] }
  0xc1   : > { %620 = vmatpush.xpose.msrb.mxu2 %v325_v62  ;;  %640 = vmatpush.xpose.msrb.mxu3 %v326_v63  ;;  %v359_v62 = vld [vmem:[%s1270_s15 + $0x410] sm:$0xff]  ;;  %v360_v63 = vld [vmem:[%s1270_s15 + $0x418] sm:$0xff] }
  0xc2   : > { %580 = vmatpush.xpose.msrb.mxu0 %v293_v2  ;;  %600 = vmatpush.xpose.msrb.mxu1 %v294_v3  ;;  %v483_v2 = vld [vmem:[%s1270_s15 + $0x7f0] sm:$0xff]  ;;  %v484_v3 = vld [vmem:[%s1270_s15 + $0x7f8] sm:$0xff] }
  0xc4   : > { %621 = vmatmul.f32.vlgmr.msrb.gmra.mxu2 %v1372_v32  ;;  %641 = vmatmul.f32.vlgmr.msrb.gmra.mxu3 %v1374_v33 }
  0xc5   : > { %685 = vmatpush.xpose.msra.mxu2 %v419_v0  ;;  %705 = vmatpush.xpose.msra.mxu3 %v420_v1  ;;  %v389_v0 = vld [vmem:[%s1270_s15 + $0x500] sm:$0xff]  ;;  %v390_v1 = vld [vmem:[%s1270_s15 + $0x508] sm:$0xff] }
  0xc6   : > { %645 = vmatpush.xpose.msra.mxu0 %v387_v4  ;;  %665 = vmatpush.xpose.msra.mxu1 %v388_v5  ;;  %v357_v4 = vld [vmem:[%s1270_s15 + $0x400] sm:$0xff]  ;;  %v358_v5 = vld [vmem:[%s1270_s15 + $0x408] sm:$0xff] }
  0xc7   : > { %581 = vmatmul.f32.vlgmr.msrb.gmra.mxu0 %v1372_v32  ;;  %601 = vmatmul.f32.vlgmr.msrb.gmra.mxu1 %v1374_v33 }
  0xc9   : > { %686 = vmatpush.xpose.msra.mxu2 %v417_v6  ;;  %706 = vmatpush.xpose.msra.mxu3 %v418_v7  ;;  %v451_v6 = vld [vmem:[%s1270_s15 + $0x6f0] sm:$0xff]  ;;  %v452_v7 = vld [vmem:[%s1270_s15 + $0x6f8] sm:$0xff] }
  0xca   : > { %646 = vmatpush.xpose.msra.mxu0 %v385_v8  ;;  %666 = vmatpush.xpose.msra.mxu1 %v386_v9  ;;  %v481_v8 = vld [vmem:[%s1270_s15 + $0x7e0] sm:$0xff]  ;;  %v482_v9 = vld [vmem:[%s1270_s15 + $0x7e8] sm:$0xff] }
  0xcd   : > { %687 = vmatpush.xpose.msra.mxu2 %v415_v10  ;;  %707 = vmatpush.xpose.msra.mxu3 %v416_v11  ;;  %v449_v10 = vld [vmem:[%s1270_s15 + $0x6e0] sm:$0xff]  ;;  %v450_v11 = vld [vmem:[%s1270_s15 + $0x6e8] sm:$0xff] }
  0xce   : > { %647 = vmatpush.xpose.msra.mxu0 %v383_v12  ;;  %667 = vmatpush.xpose.msra.mxu1 %v384_v13  ;;  %v479_v12 = vld [vmem:[%s1270_s15 + $0x7d0] sm:$0xff]  ;;  %v480_v13 = vld [vmem:[%s1270_s15 + $0x7d8] sm:$0xff] }
  0xd1   : > { %688 = vmatpush.xpose.msra.mxu2 %v413_v14  ;;  %708 = vmatpush.xpose.msra.mxu3 %v414_v15  ;;  %v447_v14 = vld [vmem:[%s1270_s15 + $0x6d0] sm:$0xff]  ;;  %v448_v15 = vld [vmem:[%s1270_s15 + $0x6d8] sm:$0xff] }
  0xd2   : > { %648 = vmatpush.xpose.msra.mxu0 %v381_v16  ;;  %668 = vmatpush.xpose.msra.mxu1 %v382_v17  ;;  %v477_v16 = vld [vmem:[%s1270_s15 + $0x7c0] sm:$0xff]  ;;  %v478_v17 = vld [vmem:[%s1270_s15 + $0x7c8] sm:$0xff] }
  0xd5   : > { %689 = vmatpush.xpose.msra.mxu2 %v411_v18  ;;  %709 = vmatpush.xpose.msra.mxu3 %v412_v19  ;;  %v445_v18 = vld [vmem:[%s1270_s15 + $0x6c0] sm:$0xff]  ;;  %v446_v19 = vld [vmem:[%s1270_s15 + $0x6c8] sm:$0xff] }
  0xd6   : > { %649 = vmatpush.xpose.msra.mxu0 %v379_v20  ;;  %669 = vmatpush.xpose.msra.mxu1 %v380_v21  ;;  %v475_v20 = vld [vmem:[%s1270_s15 + $0x7b0] sm:$0xff]  ;;  %v476_v21 = vld [vmem:[%s1270_s15 + $0x7b8] sm:$0xff] }
  0xd9   : > { %690 = vmatpush.xpose.msra.mxu2 %v409_v22  ;;  %710 = vmatpush.xpose.msra.mxu3 %v410_v23  ;;  %v443_v22 = vld [vmem:[%s1270_s15 + $0x6b0] sm:$0xff]  ;;  %v444_v23 = vld [vmem:[%s1270_s15 + $0x6b8] sm:$0xff] }
  0xda   : > { %650 = vmatpush.xpose.msra.mxu0 %v377_v24  ;;  %670 = vmatpush.xpose.msra.mxu1 %v378_v25  ;;  %v473_v24 = vld [vmem:[%s1270_s15 + $0x7a0] sm:$0xff]  ;;  %v474_v25 = vld [vmem:[%s1270_s15 + $0x7a8] sm:$0xff] }
  0xdd   : > { %691 = vmatpush.xpose.msra.mxu2 %v407_v26  ;;  %711 = vmatpush.xpose.msra.mxu3 %v408_v27  ;;  %v441_v26 = vld [vmem:[%s1270_s15 + $0x6a0] sm:$0xff]  ;;  %v442_v27 = vld [vmem:[%s1270_s15 + $0x6a8] sm:$0xff] }
  0xde   : > { %651 = vmatpush.xpose.msra.mxu0 %v375_v28  ;;  %671 = vmatpush.xpose.msra.mxu1 %v376_v29  ;;  %v471_v28 = vld [vmem:[%s1270_s15 + $0x790] sm:$0xff]  ;;  %v472_v29 = vld [vmem:[%s1270_s15 + $0x798] sm:$0xff] }
  0xe1   : > { %692 = vmatpush.xpose.msra.mxu2 %v405_v30  ;;  %712 = vmatpush.xpose.msra.mxu3 %v406_v31  ;;  %v439_v30 = vld [vmem:[%s1270_s15 + $0x690] sm:$0xff]  ;;  %v440_v31 = vld [vmem:[%s1270_s15 + $0x698] sm:$0xff] }
  0xe2   : > { %652 = vmatpush.xpose.msra.mxu0 %v373_v34  ;;  %672 = vmatpush.xpose.msra.mxu1 %v374_v35  ;;  %v469_v34 = vld [vmem:[%s1270_s15 + $0x780] sm:$0xff]  ;;  %v470_v35 = vld [vmem:[%s1270_s15 + $0x788] sm:$0xff] }
  0xe5   : > { %693 = vmatpush.xpose.msra.mxu2 %v403_v36  ;;  %713 = vmatpush.xpose.msra.mxu3 %v404_v37  ;;  %v437_v36 = vld [vmem:[%s1270_s15 + $0x680] sm:$0xff]  ;;  %v438_v37 = vld [vmem:[%s1270_s15 + $0x688] sm:$0xff] }
  0xe6   : > { %653 = vmatpush.xpose.msra.mxu0 %v371_v38  ;;  %673 = vmatpush.xpose.msra.mxu1 %v372_v39  ;;  %v467_v38 = vld [vmem:[%s1270_s15 + $0x770] sm:$0xff]  ;;  %v468_v39 = vld [vmem:[%s1270_s15 + $0x778] sm:$0xff] }
  0xe9   : > { %694 = vmatpush.xpose.msra.mxu2 %v401_v40  ;;  %714 = vmatpush.xpose.msra.mxu3 %v402_v41  ;;  %v435_v40 = vld [vmem:[%s1270_s15 + $0x670] sm:$0xff]  ;;  %v436_v41 = vld [vmem:[%s1270_s15 + $0x678] sm:$0xff] }
  0xea   : > { %654 = vmatpush.xpose.msra.mxu0 %v369_v42  ;;  %674 = vmatpush.xpose.msra.mxu1 %v370_v43  ;;  %v465_v42 = vld [vmem:[%s1270_s15 + $0x760] sm:$0xff]  ;;  %v466_v43 = vld [vmem:[%s1270_s15 + $0x768] sm:$0xff] }
  0xed   : > { %695 = vmatpush.xpose.msra.mxu2 %v399_v44  ;;  %715 = vmatpush.xpose.msra.mxu3 %v400_v45 }
  0xee   : > { %655 = vmatpush.xpose.msra.mxu0 %v367_v46  ;;  %675 = vmatpush.xpose.msra.mxu1 %v368_v47  ;;  %v433_v46 = vld [vmem:[%s1270_s15 + $0x660] sm:$0xff]  ;;  %v434_v47 = vld [vmem:[%s1270_s15 + $0x668] sm:$0xff] }
  0xf1   : > { %696 = vmatpush.xpose.msra.mxu2 %v397_v48  ;;  %716 = vmatpush.xpose.msra.mxu3 %v398_v49  ;;  %v463_v49 = vld [vmem:[%s1270_s15 + $0x750] sm:$0xff] }
  0xf2   : > { %656 = vmatpush.xpose.msra.mxu0 %v365_v50  ;;  %676 = vmatpush.xpose.msra.mxu1 %v366_v51  ;;  %v464_v50 = vld [vmem:[%s1270_s15 + $0x758] sm:$0xff] }
  0xf5   : > { %697 = vmatpush.xpose.msra.mxu2 %v395_v52  ;;  %717 = vmatpush.xpose.msra.mxu3 %v396_v53  ;;  %v431_v53 = vld [vmem:[%s1270_s15 + $0x650] sm:$0xff] }
  0xf6   : > { %657 = vmatpush.xpose.msra.mxu0 %v363_v54  ;;  %677 = vmatpush.xpose.msra.mxu1 %v364_v55  ;;  %v432_v54 = vld [vmem:[%s1270_s15 + $0x658] sm:$0xff] }
  0xf9   : > { %698 = vmatpush.xpose.msra.mxu2 %v393_v56  ;;  %718 = vmatpush.xpose.msra.mxu3 %v394_v57  ;;  %v461_v56 = vld [vmem:[%s1270_s15 + $0x740] sm:$0xff]  ;;  %v462_v57 = vld [vmem:[%s1270_s15 + $0x748] sm:$0xff] }
  0xfa   : > { %658 = vmatpush.xpose.msra.mxu0 %v361_v58  ;;  %678 = vmatpush.xpose.msra.mxu1 %v362_v59  ;;  %v429_v58 = vld [vmem:[%s1270_s15 + $0x640] sm:$0xff]  ;;  %v430_v59 = vld [vmem:[%s1270_s15 + $0x648] sm:$0xff] }
  0xfd   : > { %699 = vmatpush.xpose.msra.mxu2 %v391_v60  ;;  %719 = vmatpush.xpose.msra.mxu3 %v392_v61  ;;  %v459_v60 = vld [vmem:[%s1270_s15 + $0x730] sm:$0xff]  ;;  %v460_v61 = vld [vmem:[%s1270_s15 + $0x738] sm:$0xff] }
  0xfe   : > { %659 = vmatpush.xpose.msra.mxu0 %v359_v62  ;;  %679 = vmatpush.xpose.msra.mxu1 %v360_v63  ;;  %v427_v62 = vld [vmem:[%s1270_s15 + $0x630] sm:$0xff]  ;;  %v428_v63 = vld [vmem:[%s1270_s15 + $0x638] sm:$0xff] }
 0x101   : > { %700 = vmatpush.xpose.msra.mxu2 %v389_v0  ;;  %720 = vmatpush.xpose.msra.mxu3 %v390_v1  ;;  %v457_v0 = vld [vmem:[%s1270_s15 + $0x720] sm:$0xff]  ;;  %v458_v1 = vld [vmem:[%s1270_s15 + $0x728] sm:$0xff] }
 0x102   : > { %660 = vmatpush.xpose.msra.mxu0 %v357_v4  ;;  %680 = vmatpush.xpose.msra.mxu1 %v358_v5  ;;  %v455_v4 = vld [vmem:[%s1270_s15 + $0x710] sm:$0xff]  ;;  %v456_v5 = vld [vmem:[%s1270_s15 + $0x718] sm:$0xff] }
 0x104   : > { %701 = vmatmul.f32.vlgmr.msra.gmra.mxu2 %v1372_v32  ;;  %721 = vmatmul.f32.vlgmr.msra.gmra.mxu3 %v1374_v33  ;;  %v502_v44 = vpop.f32.mrf.mxu0  ;;  %v522_v45 = vpop.f32.mrf.mxu1 }
 0x105   : > { %765 = vmatpush.xpose.msrb.mxu2 %v483_v2  ;;  %785 = vmatpush.xpose.msrb.mxu3 %v484_v3  ;;  %v523_v48 = vadd.f32 %v522_v45, %v502_v44  ;;  %v425_v2 = vld [vmem:[%s1270_s15 + $0x620] sm:$0xff]  ;;  %v426_v3 = vld [vmem:[%s1270_s15 + $0x628] sm:$0xff] }
 0x106   : > { %725 = vmatpush.xpose.msrb.mxu0 %v451_v6  ;;  %745 = vmatpush.xpose.msrb.mxu1 %v452_v7  ;;  %v423_v6 = vld [vmem:[%s1270_s15 + $0x610] sm:$0xff]  ;;  %v424_v7 = vld [vmem:[%s1270_s15 + $0x618] sm:$0xff] }
 0x107   : > { %661 = vmatmul.f32.vlgmr.msra.gmra.mxu0 %v1372_v32  ;;  %681 = vmatmul.f32.vlgmr.msra.gmra.mxu1 %v1374_v33  ;;  %805 = vst [vmem:[%s1526_s4] sm:$0xff] %v523_v48  ;;  %v542_v51 = vpop.f32.mrf.mxu2  ;;  %v562_v52 = vpop.f32.mrf.mxu3 }
 0x108   : > { %v563_v55 = vadd.f32 %v562_v52, %v542_v51 }
 0x109   : > { %766 = vmatpush.xpose.msrb.mxu2 %v481_v8  ;;  %786 = vmatpush.xpose.msrb.mxu3 %v482_v9  ;;  %v453_v8 = vld [vmem:[%s1270_s15 + $0x700] sm:$0xff]  ;;  %v454_v9 = vld [vmem:[%s1270_s15 + $0x708] sm:$0xff] }
 0x10a   : > { %726 = vmatpush.xpose.msrb.mxu0 %v449_v10  ;;  %746 = vmatpush.xpose.msrb.mxu1 %v450_v11  ;;  %806 = vst [vmem:[%s1526_s4 + $0x8] sm:$0xff] %v563_v55  ;;  %v421_v10 = vld [vmem:[%s1270_s15 + $0x600] sm:$0xff]  ;;  %v422_v11 = vld [vmem:[%s1270_s15 + $0x608] sm:$0xff] }
 0x10d   : > { %767 = vmatpush.xpose.msrb.mxu2 %v479_v12  ;;  %787 = vmatpush.xpose.msrb.mxu3 %v480_v13 }
 0x10e   : > { %727 = vmatpush.xpose.msrb.mxu0 %v447_v14  ;;  %747 = vmatpush.xpose.msrb.mxu1 %v448_v15 }
 0x111   : > { %768 = vmatpush.xpose.msrb.mxu2 %v477_v16  ;;  %788 = vmatpush.xpose.msrb.mxu3 %v478_v17 }
 0x112   : > { %728 = vmatpush.xpose.msrb.mxu0 %v445_v18  ;;  %748 = vmatpush.xpose.msrb.mxu1 %v446_v19 }
 0x115   : > { %769 = vmatpush.xpose.msrb.mxu2 %v475_v20  ;;  %789 = vmatpush.xpose.msrb.mxu3 %v476_v21 }
 0x116   : > { %729 = vmatpush.xpose.msrb.mxu0 %v443_v22  ;;  %749 = vmatpush.xpose.msrb.mxu1 %v444_v23 }
 0x119   : > { %770 = vmatpush.xpose.msrb.mxu2 %v473_v24  ;;  %790 = vmatpush.xpose.msrb.mxu3 %v474_v25 }
 0x11a   : > { %730 = vmatpush.xpose.msrb.mxu0 %v441_v26  ;;  %750 = vmatpush.xpose.msrb.mxu1 %v442_v27 }
 0x11d   : > { %771 = vmatpush.xpose.msrb.mxu2 %v471_v28  ;;  %791 = vmatpush.xpose.msrb.mxu3 %v472_v29 }
 0x11e   : > { %731 = vmatpush.xpose.msrb.mxu0 %v439_v30  ;;  %751 = vmatpush.xpose.msrb.mxu1 %v440_v31 }
 0x121   : > { %772 = vmatpush.xpose.msrb.mxu2 %v469_v34  ;;  %792 = vmatpush.xpose.msrb.mxu3 %v470_v35 }
 0x122   : > { %732 = vmatpush.xpose.msrb.mxu0 %v437_v36  ;;  %752 = vmatpush.xpose.msrb.mxu1 %v438_v37 }
 0x125   : > { %773 = vmatpush.xpose.msrb.mxu2 %v467_v38  ;;  %793 = vmatpush.xpose.msrb.mxu3 %v468_v39 }
 0x126   : > { %733 = vmatpush.xpose.msrb.mxu0 %v435_v40  ;;  %753 = vmatpush.xpose.msrb.mxu1 %v436_v41 }
 0x129   : > { %774 = vmatpush.xpose.msrb.mxu2 %v465_v42  ;;  %794 = vmatpush.xpose.msrb.mxu3 %v466_v43 }
 0x12a   : > { %734 = vmatpush.xpose.msrb.mxu0 %v433_v46  ;;  %754 = vmatpush.xpose.msrb.mxu1 %v434_v47 }
 0x12d   : > { %775 = vmatpush.xpose.msrb.mxu2 %v463_v49  ;;  %795 = vmatpush.xpose.msrb.mxu3 %v464_v50 }
 0x12e   : > { %735 = vmatpush.xpose.msrb.mxu0 %v431_v53  ;;  %755 = vmatpush.xpose.msrb.mxu1 %v432_v54 }
 0x131   : > { %776 = vmatpush.xpose.msrb.mxu2 %v461_v56  ;;  %796 = vmatpush.xpose.msrb.mxu3 %v462_v57 }
 0x132   : > { %736 = vmatpush.xpose.msrb.mxu0 %v429_v58  ;;  %756 = vmatpush.xpose.msrb.mxu1 %v430_v59 }
 0x135   : > { %777 = vmatpush.xpose.msrb.mxu2 %v459_v60  ;;  %797 = vmatpush.xpose.msrb.mxu3 %v460_v61 }
 0x136   : > { %737 = vmatpush.xpose.msrb.mxu0 %v427_v62  ;;  %757 = vmatpush.xpose.msrb.mxu1 %v428_v63 }
 0x139   : > { %778 = vmatpush.xpose.msrb.mxu2 %v457_v0  ;;  %798 = vmatpush.xpose.msrb.mxu3 %v458_v1 }
 0x13a   : > { %738 = vmatpush.xpose.msrb.mxu0 %v425_v2  ;;  %758 = vmatpush.xpose.msrb.mxu1 %v426_v3 }
 0x13d   : > { %779 = vmatpush.xpose.msrb.mxu2 %v455_v4  ;;  %799 = vmatpush.xpose.msrb.mxu3 %v456_v5 }
 0x13e   : > { %739 = vmatpush.xpose.msrb.mxu0 %v423_v6  ;;  %759 = vmatpush.xpose.msrb.mxu1 %v424_v7 }
 0x141   : > { %780 = vmatpush.xpose.msrb.mxu2 %v453_v8  ;;  %800 = vmatpush.xpose.msrb.mxu3 %v454_v9 }
 0x142   : > { %740 = vmatpush.xpose.msrb.mxu0 %v421_v10  ;;  %760 = vmatpush.xpose.msrb.mxu1 %v422_v11 }
 0x144   : > { %781 = vmatmul.f32.vlgmr.msrb.gmra.mxu2 %v1372_v32  ;;  %801 = vmatmul.f32.vlgmr.msrb.gmra.mxu3 %v1374_v33  ;;  %v582_v12 = vpop.f32.mrf.mxu0  ;;  %v602_v13 = vpop.f32.mrf.mxu1 }
 0x145   : > { %741 = vmatmul.f32.vlgmr.msrb.gmra.mxu0 %v1372_v32  ;;  %761 = vmatmul.f32.vlgmr.msrb.gmra.mxu1 %v1374_v33  ;;  %v603_v14 = vadd.f32 %v602_v13, %v582_v12 }
 0x147   : > { %807 = vst [vmem:[%s1526_s4 + $0x10] sm:$0xff] %v603_v14  ;;  %v622_v15 = vpop.f32.mrf.mxu2  ;;  %v642_v16 = vpop.f32.mrf.mxu3 }
 0x148   : > { %v643_v17 = vadd.f32 %v642_v16, %v622_v15 }
 0x14a   : > { %808 = vst [vmem:[%s1526_s4 + $0x18] sm:$0xff] %v643_v17 }
 0x184   : > { %v662_v18 = vpop.f32.mrf.mxu0  ;;  %v682_v19 = vpop.f32.mrf.mxu1 }
 0x185   : > { %v683_v20 = vadd.f32 %v682_v19, %v662_v18 }
 0x187   : > { %809 = vst [vmem:[%s1526_s4 + $0x20] sm:$0xff] %v683_v20  ;;  %v702_v21 = vpop.f32.mrf.mxu2  ;;  %v722_v22 = vpop.f32.mrf.mxu3 }
 0x188   : > { %v723_v32 = vadd.f32 %v722_v22, %v702_v21 }
 0x18a   : > { %810 = vst [vmem:[%s1526_s4 + $0x28] sm:$0xff] %v723_v32 }
 0x1c2   : > { %v742_v33 = vpop.f32.mrf.mxu0  ;;  %v762_v23 = vpop.f32.mrf.mxu1 }
 0x1c3   : > { %v763_v24 = vadd.f32 %v762_v23, %v742_v33 }
 0x1c5   : > { %811 = vst [vmem:[%s1526_s4 + $0x30] sm:$0xff] %v763_v24 }
 0x1c7   : > { %v782_v25 = vpop.f32.mrf.mxu2  ;;  %v802_v26 = vpop.f32.mrf.mxu3 }
 0x1c8   : > { %v803_v27 = vadd.f32 %v802_v26, %v782_v25 }
 0x1ca   : > { %812 = vst [vmem:[%s1526_s4 + $0x38] sm:$0xff] %v803_v27 }
 0x1cb PF: > { %s16_s14 = sadd.s32 1, %s1128_s14   ;;  %s1592_s9 = smov %s1112_s10 }
 0x1cc   : > { %p13_p8 = scmp.ge.s32.totalorder %s16_s14, 7   ;;  %s1593_s10 = smov %s1116_s11 }
 0x1cd   : > { %s1594_s11 = smov %s1205_s22  ;;  %s1595_s12 = smov %s1124_s13 }
 0x1ce   : > { %s1596_s13 = smov %s1598_s16  ;;  %15 = sbr.rel (!%p13_p8) target bundleno = 5 (0x5), region = 74 }
 0x1d3   :  { %843 = vsyncpa [#allocation3], 1 }
 0x1d4   :  { %845 = vsyncpa [#allocation3 + $0x1], 1 }
 0x1d5   :  { %846 = vsyncpa [#allocation5], 1 }
 0x1d6   :  { %848 = vsyncpa [#allocation5 + $0x1], 1 }

</bundles_post_ra>
